<compile_context>
chip_gen: v5e
topology: v5e:2x2
jax: 0.10.0
libtpu: 0.0.40
codegen_flags: <defaults>
</compile_context>

<pallas_src>
import functools

import jax
import jax.numpy as jnp
from jax.experimental import pallas as pl
from jax.experimental.pallas import tpu as pltpu


def _vmem_limit_bytes():
    """Per-generation VMEM budget: 3/4 of physical, capped at 100 MiB."""
    try:
        cap = int(pltpu.get_tpu_info().vmem_capacity_bytes)
        return min(cap * 3 // 4, 100 * 1024 * 1024)
    except Exception:
        return 48 * 1024 * 1024            # safe fallback (fits v7x's 64 MiB)


_VMEM_LIMIT = _vmem_limit_bytes()
_SUBLANE_TILES = (512, 256, 128, 64, 32, 16, 8)
_LANE_TILES = (512, 256, 128)


def _pick_tile(dim, candidates):
    """Largest candidate tile that evenly divides `dim`, else the full dim."""
    for c in candidates:
        if dim >= c and dim % c == 0:
            return c
    return dim


# ------------------------------ tiled linear --------------------------------

def _linear_kernel(x_ref, w_ref, b_ref, o_ref, acc_ref, *, activation):
    @pl.when(pl.program_id(2) == 0)
    def _():
        acc_ref[...] = jnp.zeros_like(acc_ref)

    acc_ref[...] += jnp.dot(x_ref[...], w_ref[...],
                            preferred_element_type=jnp.float32)

    @pl.when(pl.program_id(2) == pl.num_programs(2) - 1)
    def _():
        z = acc_ref[...] + b_ref[...]
        if activation == "tanh":
            z = jnp.tanh(z)
        elif activation == "gelu":
            z = jax.nn.gelu(z, approximate=True)
        elif activation == "sigmoid":
            z = jax.nn.sigmoid(z)
        o_ref[...] = z.astype(o_ref.dtype)


def linear_pallas(x, w, b, activation=None, out_dtype=jnp.bfloat16):
    """x:(M,K) bf16 @ w:(K,N) bf16 + b:(N,) f32 -> (M,N), gridded & pipelined."""
    M, K = x.shape
    N = w.shape[1]
    tm = _pick_tile(M, _SUBLANE_TILES)
    tk = _pick_tile(K, _LANE_TILES)
    tn = _pick_tile(N, _LANE_TILES)
    grid = (M // tm, N // tn, K // tk)
    kernel = functools.partial(_linear_kernel, activation=activation)
    return pl.pallas_call(
        kernel,
        out_shape=jax.ShapeDtypeStruct((M, N), out_dtype),
        grid_spec=pltpu.PrefetchScalarGridSpec(
            num_scalar_prefetch=0,
            grid=grid,
            in_specs=[
                pl.BlockSpec((tm, tk), lambda i, j, k: (i, k)),
                pl.BlockSpec((tk, tn), lambda i, j, k: (k, j)),
                pl.BlockSpec((1, tn), lambda i, j, k: (0, j)),
            ],
            out_specs=pl.BlockSpec((tm, tn), lambda i, j, k: (i, j)),
            scratch_shapes=[pltpu.VMEM((tm, tn), jnp.float32)],
        ),
        compiler_params=pltpu.CompilerParams(
            dimension_semantics=("parallel", "parallel", "arbitrary"),
            vmem_limit_bytes=_VMEM_LIMIT),
    )(x, w, b.reshape(1, N).astype(jnp.float32))


# ------------------------------ LayerNorm ------------------------------------

def _ln_kernel(x_ref, g_ref, b_ref, o_ref):
    x = x_ref[...].astype(jnp.float32)
    mu = jnp.mean(x, axis=-1, keepdims=True)
    var = jnp.mean(jnp.square(x - mu), axis=-1, keepdims=True)
    y = (x - mu) * jax.lax.rsqrt(var + 1e-12)
    o_ref[...] = (y * g_ref[...] + b_ref[...]).astype(o_ref.dtype)


def layernorm_pallas(x, gamma, beta, out_dtype=jnp.bfloat16):
    M, D = x.shape
    tm = _pick_tile(M, _SUBLANE_TILES)
    return pl.pallas_call(
        _ln_kernel,
        out_shape=jax.ShapeDtypeStruct((M, D), out_dtype),
        grid=(M // tm,),
        in_specs=[pl.BlockSpec((tm, D), lambda i: (i, 0)),
                  pl.BlockSpec((1, D), lambda i: (0, 0)),
                  pl.BlockSpec((1, D), lambda i: (0, 0))],
        out_specs=pl.BlockSpec((tm, D), lambda i: (i, 0)),
        compiler_params=pltpu.CompilerParams(
            dimension_semantics=("parallel",),
            vmem_limit_bytes=_VMEM_LIMIT),
    )(x, gamma.reshape(1, D).astype(jnp.float32),
      beta.reshape(1, D).astype(jnp.float32))


# ----------------- fused output-projection + residual + LN -------------------

def _proj_add_ln_kernel(x_ref, r_ref, w_ref, b_ref, g_ref, bln_ref, o_ref):
    # out = LayerNorm(residual + x @ W + b); no HBM round trip for x@W.
    z = jnp.dot(x_ref[...], w_ref[...],
                preferred_element_type=jnp.float32) + b_ref[...]
    x = r_ref[...].astype(jnp.float32) + z
    mu = jnp.mean(x, axis=-1, keepdims=True)
    var = jnp.mean(jnp.square(x - mu), axis=-1, keepdims=True)
    y = (x - mu) * jax.lax.rsqrt(var + 1e-12)
    o_ref[...] = (y * g_ref[...] + bln_ref[...]).astype(o_ref.dtype)


def proj_add_ln_pallas(x, residual, w, b, gamma, beta, out_dtype=jnp.bfloat16):
    """LayerNorm(residual + x @ W + b), per M-tile; W stays resident in VMEM."""
    # TODO(synk): pipeline_mode=pl.Buffered(1) on the constant W spec would
    # halve its VMEM residency on v7x.
    M, K = x.shape
    N = w.shape[1]
    tm = _pick_tile(M, _SUBLANE_TILES)
    return pl.pallas_call(
        _proj_add_ln_kernel,
        out_shape=jax.ShapeDtypeStruct((M, N), out_dtype),
        grid=(M // tm,),
        in_specs=[pl.BlockSpec((tm, K), lambda i: (i, 0)),
                  pl.BlockSpec((tm, N), lambda i: (i, 0)),
                  pl.BlockSpec((K, N), lambda i: (0, 0)),
                  pl.BlockSpec((1, N), lambda i: (0, 0)),
                  pl.BlockSpec((1, N), lambda i: (0, 0)),
                  pl.BlockSpec((1, N), lambda i: (0, 0))],
        out_specs=pl.BlockSpec((tm, N), lambda i: (i, 0)),
        compiler_params=pltpu.CompilerParams(
            dimension_semantics=("parallel",),
            vmem_limit_bytes=_VMEM_LIMIT),
    )(x, residual, w, b.reshape(1, N).astype(jnp.float32),
      gamma.reshape(1, N).astype(jnp.float32),
      beta.reshape(1, N).astype(jnp.float32))


# --------------------- fused, F-blocked FFN + residual + LN -------------------

def _ffn_ln_kernel(h_ref, w1_ref, b1_ref, w2_ref, b2_ref, g_ref, bln_ref,
                   o_ref, acc_ref):
    f = pl.program_id(1)

    @pl.when(f == 0)
    def _():
        acc_ref[...] = jnp.zeros_like(acc_ref)

    h = h_ref[...]                                            # (tm, D) bf16
    z1 = jnp.dot(h, w1_ref[...],
                 preferred_element_type=jnp.float32) + b1_ref[...]
    # NOTE: tanh-approx GELU (HF BERT default is exact erf GELU; tiny delta).
    z1 = jax.nn.gelu(z1, approximate=True)                    # (tm, tf) f32
    acc_ref[...] += jnp.dot(z1.astype(w2_ref.dtype), w2_ref[...],
                            preferred_element_type=jnp.float32)

    @pl.when(f == pl.num_programs(1) - 1)
    def _():
        x = h.astype(jnp.float32) + acc_ref[...] + b2_ref[...]
        mu = jnp.mean(x, axis=-1, keepdims=True)
        var = jnp.mean(jnp.square(x - mu), axis=-1, keepdims=True)
        y = (x - mu) * jax.lax.rsqrt(var + 1e-12)
        o_ref[...] = (y * g_ref[...] + bln_ref[...]).astype(o_ref.dtype)


def ffn_ln_pallas(h, w1, b1, w2, b2, gamma, beta, out_dtype=jnp.bfloat16):
    """LayerNorm(h + gelu(h@W1+b1)@W2+b2).  The F dimension is a streamed
    'arbitrary' grid axis: W1/W2 tiles pipeline through VMEM and the (tm, tf)
    gelu chunk / (tm, D) f32 accumulator are the only live intermediates."""
    M, D = h.shape
    F = w1.shape[1]
    tm = _pick_tile(M, _SUBLANE_TILES)
    tf = _pick_tile(F, _LANE_TILES)
    grid = (M // tm, F // tf)
    return pl.pallas_call(
        _ffn_ln_kernel,
        out_shape=jax.ShapeDtypeStruct((M, D), out_dtype),
        grid_spec=pltpu.PrefetchScalarGridSpec(
            num_scalar_prefetch=0,
            grid=grid,
            in_specs=[pl.BlockSpec((tm, D), lambda i, f: (i, 0)),
                      pl.BlockSpec((D, tf), lambda i, f: (0, f)),
                      pl.BlockSpec((1, tf), lambda i, f: (0, f)),
                      pl.BlockSpec((tf, D), lambda i, f: (f, 0)),
                      pl.BlockSpec((1, D), lambda i, f: (0, 0)),
                      pl.BlockSpec((1, D), lambda i, f: (0, 0)),
                      pl.BlockSpec((1, D), lambda i, f: (0, 0))],
            out_specs=pl.BlockSpec((tm, D), lambda i, f: (i, 0)),
            scratch_shapes=[pltpu.VMEM((tm, D), jnp.float32)],
        ),
        compiler_params=pltpu.CompilerParams(
            dimension_semantics=("parallel", "arbitrary"),
            vmem_limit_bytes=_VMEM_LIMIT),
    )(h, w1, b1.reshape(1, F).astype(jnp.float32),
      w2, b2.reshape(1, D).astype(jnp.float32),
      gamma.reshape(1, D).astype(jnp.float32),
      beta.reshape(1, D).astype(jnp.float32))


# ------------------------------- attention -----------------------------------

def _attention_kernel(qkv_ref, m_ref, o_ref, ctx_ref, *, n_heads, dh):
    # qkv_ref: (S, 3D) bf16 for one batch element; 1/sqrt(dh) already folded
    # into the Q projection weights, so no score scaling here.
    D = n_heads * dh
    mask = m_ref[...]                                         # (1, S) f32 bias
    for h in range(n_heads):                                  # static, unrolled
        q = qkv_ref[:, h * dh:(h + 1) * dh]                   # (S, dh) bf16
        k = qkv_ref[:, D + h * dh:D + (h + 1) * dh]
        v = qkv_ref[:, 2 * D + h * dh:2 * D + (h + 1) * dh]
        # contract last dims directly -> no explicit (S, dh) k.T XLU transpose
        s = jax.lax.dot_general(q, k, (((1,), (1,)), ((), ())),
                                preferred_element_type=jnp.float32)   # (S, S)
        s = s + mask
        s = s - jnp.max(s, axis=-1, keepdims=True)
        p = jnp.exp(s)
        # approx reciprocal -> probs sum to 1 within ~1e-3 (fine for inference)
        p = p * pl.reciprocal(jnp.sum(p, axis=-1, keepdims=True), approx=True)
        # per-head result goes to a VMEM scratch at a static lane offset
        # (no lane-packing concatenate on the XLU/VPU).
        ctx_ref[:, h * dh:(h + 1) * dh] = jnp.dot(
            p.astype(v.dtype), v, preferred_element_type=jnp.float32)
    # single lane-dense (S, D) store
    o_ref[...] = ctx_ref[...].astype(o_ref.dtype)


def attention_pallas(qkv, mask_bias, *, n_heads):
    """qkv: (B, S, 3D) bf16 fused projections; mask_bias: (B, 1, S) f32."""
    # TODO(synk): for S >= 256 switch to a KV-tiled flash-style online softmax
    # so the (S, S) scores never fill VMEM.
    # TODO(synk): for dh < 128 on v6e/v7x, pad each head's Q/K columns to 128
    # lanes in w_qkv (or process two heads per slab) to fill the 256-deep MXU.
    # TODO(synk): add a second parallel grid axis (heads or q-tiles) so v7x's
    # two TensorCores are both busy at small batch sizes.
    B, S, threeD = qkv.shape
    D = threeD // 3
    dh = D // n_heads
    kernel = functools.partial(_attention_kernel, n_heads=n_heads, dh=dh)
    return pl.pallas_call(
        kernel,
        out_shape=jax.ShapeDtypeStruct((B, S, D), jnp.bfloat16),
        grid=(B,),
        in_specs=[pl.BlockSpec((None, S, threeD), lambda b: (b, 0, 0)),
                  pl.BlockSpec((None, 1, S), lambda b: (b, 0, 0))],
        out_specs=pl.BlockSpec((None, S, D), lambda b: (b, 0, 0)),
        scratch_shapes=[pltpu.VMEM((S, D), jnp.float32)],
        compiler_params=pltpu.CompilerParams(
            dimension_semantics=("parallel",),
            vmem_limit_bytes=_VMEM_LIMIT),
    )(qkv, mask_bias)


# ------------------------- fused pooler + classifier --------------------------

def _pooler_head_kernel(cls_ref, pw_ref, pb_ref, cw_ref, cb_ref, o_ref):
    pooled = jnp.tanh(jnp.dot(cls_ref[...], pw_ref[...],
                              preferred_element_type=jnp.float32) + pb_ref[...])
    # nn.Dropout(0.5) on `pooled` is identity at inference (eval mode).
    # TODO(synk): training-mode dropout would use pltpu.prng_seed/prng_random_bits.
    logit = jnp.dot(pooled.astype(cw_ref.dtype), cw_ref[...],
                    preferred_element_type=jnp.float32) + cb_ref[...]
    o_ref[...] = jax.nn.sigmoid(logit)


def pooler_head_pallas(cls, pool_w, pool_b, cls_w_pad, cls_b_pad):
    """sigmoid(tanh(cls @ Wp + bp) @ Wc + bc); classifier output is padded to a
    128-wide lane-dense slab, column 0 sliced off in JAX."""
    B, D = cls.shape
    Npad = cls_w_pad.shape[1]
    out = pl.pallas_call(
        _pooler_head_kernel,
        out_shape=jax.ShapeDtypeStruct((B, Npad), jnp.float32),
        in_specs=[pl.BlockSpec(memory_space=pltpu.MemorySpace.VMEM)] * 5,
        out_specs=pl.BlockSpec(memory_space=pltpu.MemorySpace.VMEM),
    )(cls, pool_w, pool_b.reshape(1, D).astype(jnp.float32),
      cls_w_pad, cls_b_pad.reshape(1, Npad).astype(jnp.float32))
    return out[:, 0]                                           # (B,) f32


# ------------------------- parameter initialization ---------------------------

def init_params(key, *, vocab, max_len, dim, n_heads, n_layers, ffn_dim):
    n_keys = 5 + 6 * n_layers
    ks = iter(jax.random.split(key, n_keys))
    rnd = lambda shape: 0.02 * jax.random.normal(next(ks), shape, dtype=jnp.float32)
    zeros = lambda n: jnp.zeros((n,), jnp.float32)
    ones = lambda n: jnp.ones((n,), jnp.float32)
    bf16 = lambda a: a.astype(jnp.bfloat16)

    scale = 1.0 / float(dim // n_heads) ** 0.5                 # folded into Wq/bq

    params = {
        "word_emb": rnd((vocab, dim)),
        "pos_emb": rnd((max_len, dim)),
        "type_emb": rnd((2, dim)),
        "emb_ln_g": ones(dim), "emb_ln_b": zeros(dim),
        "layers": [],
        "pool_w": bf16(rnd((dim, dim))), "pool_b": zeros(dim),
    }
    cls_w = rnd((dim, 1))
    params["cls_w_pad"] = bf16(jnp.zeros((dim, 128), jnp.float32).at[:, :1].set(cls_w))
    params["cls_b_pad"] = jnp.zeros((128,), jnp.float32)

    for _ in range(n_layers):
        wq, wk, wv = rnd((dim, dim)), rnd((dim, dim)), rnd((dim, dim))
        params["layers"].append({
            # fused QKV projection, attention scale pre-folded into Q
            "w_qkv": bf16(jnp.concatenate([wq * scale, wk, wv], axis=1)),
            "b_qkv": jnp.concatenate([zeros(dim), zeros(dim), zeros(dim)]),
            "wo": bf16(rnd((dim, dim))), "bo": zeros(dim),
            "ln1_g": ones(dim), "ln1_b": zeros(dim),
            "w1": bf16(rnd((dim, ffn_dim))), "b1": zeros(ffn_dim),
            "w2": bf16(rnd((ffn_dim, dim))), "b2": zeros(dim),
            "ln2_g": ones(dim), "ln2_b": zeros(dim),
        })
    return params


# ------------------------------- forward pass ---------------------------------

def bert_classifier_forward(params, input_ids, attention_mask, *, n_heads):
    B, S = input_ids.shape
    D = params["word_emb"].shape[1]

    # embeddings (gathers are glue; layernorm in Pallas, output bf16)
    x = params["word_emb"][input_ids]                          # (B, S, D) f32
    x = x + params["pos_emb"][None, :S, :]
    x = x + params["type_emb"][0][None, None, :]               # token_type 0
    h = layernorm_pallas(x.reshape(B * S, D),
                         params["emb_ln_g"], params["emb_ln_b"])   # (B*S, D) bf16

    # NOTE: a padding-only row (mask all zero) would yield a uniform attention
    # distribution after max-subtraction; not possible here (CLS never masked).
    mask_bias = ((1.0 - attention_mask.astype(jnp.float32)) * -1e9).reshape(B, 1, S)

    for lp in params["layers"]:
        # fused QKV projection: one HBM read of h, one lane-dense (M, 3D) output
        # TODO(synk): on v5e, fuse this projection into the attention kernel so
        # the (B*S, 3D) qkv tensor never round-trips HBM.
        qkv = linear_pallas(h, lp["w_qkv"], lp["b_qkv"])       # (B*S, 3D) bf16
        ctx = attention_pallas(qkv.reshape(B, S, 3 * D), mask_bias,
                               n_heads=n_heads)                # (B, S, D) bf16
        # fused output projection + residual + LayerNorm (no HBM round trip)
        h = proj_add_ln_pallas(ctx.reshape(B * S, D), h, lp["wo"], lp["bo"],
                               lp["ln1_g"], lp["ln1_b"])
        # fused, F-blocked FFN (W1 + gelu + W2) + residual + LayerNorm
        h = ffn_ln_pallas(h, lp["w1"], lp["b1"], lp["w2"], lp["b2"],
                          lp["ln2_g"], lp["ln2_b"])

    cls = h.reshape(B, S, D)[:, 0, :]                          # (B, D) bf16
    # pooler(tanh) + dropout(identity, eval) + Linear(dim,1) + sigmoid, fused
    score = pooler_head_pallas(cls, params["pool_w"], params["pool_b"],
                               params["cls_w_pad"], params["cls_b_pad"])
    return score                                               # (B,) f32


# ----------------------------------- main --------------------------------------

if __name__ == "__main__":
    B, S = 2, 8
    VOCAB, MAX_LEN = 50, 16
    DIM, N_HEADS, N_LAYERS, FFN = 32, 2, 2, 64

    key = jax.random.PRNGKey(0)
    k_params, k_ids = jax.random.split(key)
    params = init_params(k_params, vocab=VOCAB, max_len=MAX_LEN, dim=DIM,
                         n_heads=N_HEADS, n_layers=N_LAYERS, ffn_dim=FFN)

    input_ids = jax.random.randint(k_ids, (B, S), 0, VOCAB, dtype=jnp.int32)
    attention_mask = jnp.array([[1, 1, 1, 1, 1, 1, 1, 1],
                                [1, 1, 1, 1, 1, 1, 0, 0]], dtype=jnp.int32)

    score = bert_classifier_forward(params, input_ids, attention_mask,
                                    n_heads=N_HEADS)
    score = jax.block_until_ready(score)
    assert score.shape == (B,) and score.dtype == jnp.float32
    assert bool(jnp.all((score >= 0.0) & (score <= 1.0)))
    print("KERNEL_OK")
</pallas_src>

<mosaic_0001>
module attributes {stable_mosaic.version = 11 : i64} {
  func.func @_ln_kernel(%arg0: i32, %arg1: memref<16x32xf32, #tpu.memory_space<vmem>>, %arg2: memref<1x32xf32, #tpu.memory_space<vmem>>, %arg3: memref<1x32xf32, #tpu.memory_space<vmem>>, %arg4: memref<16x32xbf16, #tpu.memory_space<vmem>>) attributes {dimension_semantics = [#tpu.dimension_semantics<parallel>], iteration_bounds = array<i64: 1>, scalar_prefetch = 0 : i64, scratch_operands = 0 : i64, tpu.core_type = #tpu.core_type<tc>, window_params = [{transform_indices = @transform_0, window_bounds = array<i64: 16, 32>}, {pipeline_mode = #tpu.pipeline_mode<synchronous>, transform_indices = @transform_1, window_bounds = array<i64: 1, 32>}, {pipeline_mode = #tpu.pipeline_mode<synchronous>, transform_indices = @transform_2, window_bounds = array<i64: 1, 32>}, {transform_indices = @transform_3, window_bounds = array<i64: 16, 32>}]} {
    %c0 = arith.constant 0 : index
    %c0_0 = arith.constant 0 : index
    %0 = vector.load %arg1[%c0, %c0_0] : memref<16x32xf32, #tpu.memory_space<vmem>>, vector<16x32xf32>
    %cst = arith.constant dense<0.000000e+00> : vector<16xf32>
    %1 = vector.multi_reduction <add>, %0, %cst [1] : vector<16x32xf32> to vector<16xf32>
    %2 = vector.shape_cast %1 : vector<16xf32> to vector<16x1xf32>
    %cst_1 = arith.constant 3.200000e+01 : f32
    %3 = vector.broadcast %cst_1 : f32 to vector<16x1xf32>
    %4 = arith.divf %2, %3 : vector<16x1xf32>
    %5 = vector.broadcast %4 : vector<16x1xf32> to vector<16x32xf32>
    %6 = arith.subf %0, %5 : vector<16x32xf32>
    %7 = arith.mulf %6, %6 : vector<16x32xf32>
    %cst_2 = arith.constant dense<0.000000e+00> : vector<16xf32>
    %8 = vector.multi_reduction <add>, %7, %cst_2 [1] : vector<16x32xf32> to vector<16xf32>
    %9 = vector.shape_cast %8 : vector<16xf32> to vector<16x1xf32>
    %cst_3 = arith.constant 3.200000e+01 : f32
    %10 = vector.broadcast %cst_3 : f32 to vector<16x1xf32>
    %11 = arith.divf %9, %10 : vector<16x1xf32>
    %12 = vector.broadcast %4 : vector<16x1xf32> to vector<16x32xf32>
    %13 = arith.subf %0, %12 : vector<16x32xf32>
    %cst_4 = arith.constant 9.99999996E-13 : f32
    %14 = vector.broadcast %cst_4 : f32 to vector<16x1xf32>
    %15 = arith.addf %11, %14 : vector<16x1xf32>
    %16 = math.rsqrt %15 : vector<16x1xf32>
    %17 = vector.broadcast %16 : vector<16x1xf32> to vector<16x32xf32>
    %18 = arith.mulf %13, %17 : vector<16x32xf32>
    %c0_5 = arith.constant 0 : index
    %c0_6 = arith.constant 0 : index
    %19 = vector.load %arg2[%c0_5, %c0_6] : memref<1x32xf32, #tpu.memory_space<vmem>>, vector<1x32xf32>
    %20 = vector.broadcast %19 : vector<1x32xf32> to vector<16x32xf32>
    %21 = arith.mulf %18, %20 : vector<16x32xf32>
    %c0_7 = arith.constant 0 : index
    %c0_8 = arith.constant 0 : index
    %22 = vector.load %arg3[%c0_7, %c0_8] : memref<1x32xf32, #tpu.memory_space<vmem>>, vector<1x32xf32>
    %23 = vector.broadcast %22 : vector<1x32xf32> to vector<16x32xf32>
    %24 = arith.addf %21, %23 : vector<16x32xf32>
    %25 = arith.truncf %24 : vector<16x32xf32> to vector<16x32xbf16>
    %c0_9 = arith.constant 0 : index
    %c0_10 = arith.constant 0 : index
    %26 = vector.load %arg4[%c0_9, %c0_10] : memref<16x32xbf16, #tpu.memory_space<vmem>>, vector<16x32xbf16>
    tpu.vector_store %arg4[%c0_9, %c0_10], %25 {strides = array<i32>} : memref<16x32xbf16, #tpu.memory_space<vmem>>, vector<16x32xbf16>,
    return
  }
  func.func @transform_0(%arg0: i32) -> (i32, i32) {
    %c0_i32 = arith.constant 0 : i32
    %c0_i32_0 = arith.constant 0 : i32
    return %arg0, %c0_i32 : i32, i32
  }
  func.func @transform_1(%arg0: i32) -> (i32, i32) {
    %c0_i32 = arith.constant 0 : i32
    %c0_i32_0 = arith.constant 0 : i32
    %c0_i32_1 = arith.constant 0 : i32
    return %c0_i32, %c0_i32_0 : i32, i32
  }
  func.func @transform_2(%arg0: i32) -> (i32, i32) {
    %c0_i32 = arith.constant 0 : i32
    %c0_i32_0 = arith.constant 0 : i32
    %c0_i32_1 = arith.constant 0 : i32
    return %c0_i32, %c0_i32_0 : i32, i32
  }
  func.func @transform_3(%arg0: i32) -> (i32, i32) {
    %c0_i32 = arith.constant 0 : i32
    %c0_i32_0 = arith.constant 0 : i32
    return %arg0, %c0_i32 : i32, i32
  }
}

</mosaic_0001>

<bundles_post_ra>
// kernel: tpu_custom_call.1
= control target key start
LH: loop header
LB: loop body
LE: loop exit
PB: predicated region body
PF: predicated region fallthrough
CT: control target
= control target key end

     0   :  { %8 = vsyncpa [#allocation3], 0  ;;  %s274_s0 = inlined_call_operand.hbm [shape: f32[16,32], index: 0, kind: input, shape index: {}]   ;;  %s275_s1 = inlined_call_operand.hbm [shape: f32[1,32], index: 1, kind: input, shape index: {}]   ;;  %s276_s2 = inlined_call_operand.vmem [shape: f32[1,32], index: 2, kind: input, shape index: {}]   ;;  %s277_s3 = inlined_call_operand.hbm [shape: bf16[16,32], index: 3, kind: output, shape index: {}]  }
   0x1   :  { %9 = vsyncpa [#allocation6], 0 }
   0x2   :  { %10 = vsyncpa [#allocation4], 0  ;;  %s15_s14 = sshll.u32 %s274_s0, 4  ;;  %s230_s15 = smov [#allocation2]   ;;  %s16_s14 = int_to_ptr.hbm [resolvable:$true] %s15_s14 }
   0x3   :  { %s17_s16 = sshll.u32 %s230_s15, 4  ;;  %s29_s19 = sshll.u32 %s275_s1, 4  ;;  %s18_s16 = int_to_ptr.vmem [resolvable:$true] %s17_s16  ;;  %s30_s19 = int_to_ptr.hbm [resolvable:$true] %s29_s19 }
   0x4   :  { %s231_s20 = smov 128   ;;  %s232_s21 = smov 8  }
   0x5   :  { %23 = dma.hbm_to_vmem [thread:$0]  %s16_s14, 256, %s18_s16, [#allocation3], %s231_s20, %s231_s20, %s232_s21  }
   0x6   :  { %s233_s22 = smov [#allocation5]  }
   0x7   :  { %s31_s23 = sshll.u32 %s233_s22, 4  ;;  %s32_s23 = int_to_ptr.vmem [resolvable:$true] %s31_s23 }
   0x8   :  { %34 = dma.hbm_to_vmem [thread:$0]  %s30_s19, 16, %s32_s23, [#allocation6]  }
   0x9   :  { %224 = dma.done.wait [#allocation3], 256  }
   0xa   :  { %225 = vsyncadd [#allocation3], 4294967040 }
   0xb   :  { %226 = dma.done.wait [#allocation6], 16  }
   0xc   :  { %227 = vsyncadd [#allocation6], 4294967280  ;;  %vm47_vm0 = vcmask 261120   ;;  %v45_v0 = vld [vmem:[#allocation2] sm:$0xff]  ;;  %v46_v2 = vld [vmem:[#allocation2 + $0x8] sm:$0xff]  ;;  %v234_v4 = vmov 32.0  }
   0xd   :  { %v48_v1 = vsel %vm47_vm0, %v45_v0, 0.0  ;;  %v51_v3 = vsel %vm47_vm0, %v46_v2, 0.0  ;;  %146 = vrcp.f32 %v234_v4  ;;  %v144_v35 = vld [vmem:[#allocation5] ss:$0 sm:$0xff]  ;;  %v145_v38 = vld [vmem:[%s276_s2] ss:$0 sm:$0xff] }
   0xe   :  { %49 = vadd.xlane.f32.xlu0 %v48_v1  ;;  %vm113_vm7 = vcmask 257024   ;;  %s235_s24 = smov [#allocation7]   ;;  %s122_s2 = sshll.u32 %s277_s3, 4  ;;  %s123_s2 = int_to_ptr.hbm [resolvable:$true] %s122_s2 }
   0xf   :  { %s120_s25 = sshll.u32 %s235_s24, 4  ;;  %s236_s28 = smov 64   ;;  %s121_s25 = int_to_ptr.vmem [resolvable:$true] %s120_s25 }
  0x10   :  { %s237_s29 = smov 4  }
  0x13   :  { %v147_v5 = vpop.eup %146 }
  0x14   :  { %v55_v6 = vmul.f32 32.0, %v147_v5  ;;  %vm59_vm1 = vweird.f32 %v147_v5 }
  0x16   :  { %52 = vadd.xlane.f32.xlu0 %v51_v3  ;;  %v56_v7 = vsub.f32 1.0, %v55_v6 }
  0x18   :  { %v57_v8 = vmul.f32 %v147_v5, %v56_v7 }
  0x1a   :  { %v58_v9 = vadd.f32 %v147_v5, %v57_v8 }
  0x1c   :  { %v60_v10 = vsel %vm59_vm1, %v147_v5, %v58_v9 }
  0x81   :  { %v50_v11 = vpop.xlane.xlu0 %49 }
  0x82   :  { %v61_v12 = vmul.f32 %v60_v10, %v50_v11 }
  0x84   :  { %v63_v13 = vsub.f32 %v45_v0, %v61_v12 }
  0x86   :  { %v65_v14 = vmul.f32 %v63_v13, %v63_v13 }
  0x88   :  { %v67_v15 = vsel %vm47_vm0, %v65_v14, 0.0 }
  0x89   :  { %68 = vadd.xlane.f32.xlu1 %v67_v15  ;;  %v53_v16 = vpop.xlane.xlu0 %52 }
  0x8a   :  { %v62_v17 = vmul.f32 %v60_v10, %v53_v16 }
  0x8c   :  { %v64_v18 = vsub.f32 %v46_v2, %v62_v17 }
  0x8e   :  { %v66_v19 = vmul.f32 %v64_v18, %v64_v18 }
  0x90   :  { %v70_v20 = vsel %vm47_vm0, %v66_v19, 0.0 }
  0x91   :  { %71 = vadd.xlane.f32.xlu1 %v70_v20 }
  0xfc   :  { %v69_v21 = vpop.xlane.xlu1 %68 }
  0xfd   :  { %v73_v22 = vmul.f32 %v69_v21, %v60_v10 }
  0xff   :  { %v75_v23 = vadd.f32 1e-12, %v73_v22 }
 0x101   :  { %148 = vrsqrt.f32 %v75_v23  ;;  %vm83_vm3 = vweird.f32 %v75_v23 }
 0x104   :  { %v72_v24 = vpop.xlane.xlu1 %71 }
 0x105   :  { %v74_v25 = vmul.f32 %v72_v24, %v60_v10 }
 0x107   :  { %v149_v26 = vpop.eup %148  ;;  %v76_v27 = vadd.f32 1e-12, %v74_v25 }
 0x108   :  { %v78_v28 = vmul.f32 %v149_v26, %v75_v23  ;;  %vm84_vm2 = vweird.f32 %v149_v26 }
 0x109   :  { %150 = vrsqrt.f32 %v76_v27  ;;  %vm85_vm4 = vmor %vm83_vm3, %vm84_vm2  ;;  %vm93_vm6 = vweird.f32 %v76_v27 }
 0x10a   :  { %v79_v29 = vmul.f32 %v149_v26, %v78_v28 }
 0x10c   :  { %v80_v30 = vmul.f32 0.5, %v79_v29 }
 0x10e   :  { %v81_v31 = vsub.f32 1.5, %v80_v30 }
 0x10f   :  { %v151_v32 = vpop.eup %150 }
 0x110   :  { %v82_v33 = vmul.f32 %v149_v26, %v81_v31  ;;  %v88_v34 = vmul.f32 %v151_v32, %v76_v27  ;;  %vm94_vm5 = vweird.f32 %v151_v32 }
 0x111   :  { %vm95_vm8 = vmor %vm93_vm6, %vm94_vm5 }
 0x112   :  { %v86_v36 = vsel %vm85_vm4, %v149_v26, %v82_v33  ;;  %v89_v37 = vmul.f32 %v151_v32, %v88_v34 }
 0x113   :  { %v97_v39 = vmul.f32 %v86_v36, %v63_v13 }
 0x114   :  { %v90_v40 = vmul.f32 0.5, %v89_v37 }
 0x115   :  { %v103_v41 = vmul.f32 %v144_v35, %v97_v39 }
 0x116   :  { %v91_v42 = vsub.f32 1.5, %v90_v40 }
 0x117   :  { %v109_v43 = vadd.f32 %v145_v38, %v103_v41 }
 0x118   :  { %v92_v44 = vmul.f32 %v151_v32, %v91_v42 }
 0x119   :  { %v111_v45 = vpack.c.bf16 %v109_v43, %v109_v43 }
 0x11a   :  { %v96_v46 = vsel %vm95_vm8, %v151_v32, %v92_v44 }
 0x11b   :  { %v98_v47 = vmul.f32 %v96_v46, %v64_v18  ;;  %114 = vst.msk [vmem:[#allocation7] sm:$0xf] %vm113_vm7, %v111_v45 }
 0x11d   :  { %v104_v48 = vmul.f32 %v144_v35, %v98_v47 }
 0x11f   :  { %v110_v49 = vadd.f32 %v145_v38, %v104_v48 }
 0x121   :  { %v112_v50 = vpack.c.bf16 %v110_v49, %v110_v49 }
 0x123   :  { %115 = vst.msk [vmem:[#allocation7 + $0x4] sm:$0xf] %vm113_vm7, %v112_v50 }
 0x124   :  { %128 = dma.vmem_to_hbm [thread:$0]  %s121_s25, 128, %s123_s2, [#allocation4], %s236_s28, %s236_s28, %s237_s29  }
 0x125   :  { %228 = dma.done.wait [#allocation4], 128  }
 0x126   :  { %229 = vsyncadd [#allocation4], 4294967168 }
 0x127   :  { %133 = vsyncpa [#allocation3], 1 }
 0x128   :  { %134 = vsyncpa [#allocation6], 1 }
 0x129   :  { %135 = vsyncpa [#allocation4], 1 }

</bundles_post_ra>
